<compile_context>
chip_gen: v7x
topology: tpu7x:2x2x1
jax: 0.10.0
libtpu: 0.0.40
codegen_flags: <defaults>
</compile_context>

<pallas_src>
import functools

import jax
import jax.numpy as jnp
from jax.experimental import pallas as pl
from jax.experimental.pallas import tpu as pltpu

IN_DIM = 21
OUT_DIM = 10
MAX_TILE = 2048  # rows per grid step; keeps 2x double-buffered tiles tiny vs. 64 MiB VMEM (v7x)


def _round_up(n, m):
    return ((n + m - 1) // m) * m


def _mlp_kernel(x_ref, w_ref, b_ref, o_ref):
    # Single collapsed affine layer: (TB, 21) @ (21, 10) + (1, 10)
    h = jnp.dot(x_ref[...], w_ref[...], preferred_element_type=jnp.float32)
    h = h + b_ref[...]

    # F.normalize(h, p=2, dim=1): h / max(||h||_2, eps), eps = 1e-12.
    # Clamp the norm (not the squared sum) to match torch semantics exactly.
    sq = jnp.sum(h * h, axis=1, keepdims=True)
    norm = jnp.sqrt(sq)
    inv = pl.reciprocal(jnp.maximum(norm, jnp.float32(1e-12)), approx=False)
    o_ref[...] = h * inv


@functools.partial(jax.jit, static_argnames=())
def mlp_forward(x, params):
    """x: (B, 21) float32.  params: weights (in,out) and biases (1,out)."""
    b = x.shape[0]

    # Collapse the 4 linear layers into one affine map (exact: no nonlinearity).
    wc = params["w1"] @ params["w2"] @ params["w3"] @ params["w4"]          # (21, 10)
    bc = (((params["b1"] @ params["w2"] + params["b2"]) @ params["w3"]
           + params["b3"]) @ params["w4"] + params["b4"])                   # (1, 10)

    # Batch tiling: tile rows must be a multiple of 8 (sublane) unless equal to
    # the full batch; pad the batch so the grid divides evenly.
    tb = min(MAX_TILE, _round_up(b, 8))
    b_pad = _round_up(b, tb)
    if b_pad != b:
        x = jnp.pad(x, ((0, b_pad - b), (0, 0)))
    grid = (b_pad // tb,)

    out = pl.pallas_call(
        _mlp_kernel,
        out_shape=jax.ShapeDtypeStruct((b_pad, OUT_DIM), jnp.float32),
        grid=grid,
        in_specs=[
            pl.BlockSpec((tb, IN_DIM), lambda i: (i, 0)),        # activation stream
            pl.BlockSpec((IN_DIM, OUT_DIM), lambda i: (0, 0)),   # collapsed weight
            pl.BlockSpec((1, OUT_DIM), lambda i: (0, 0)),        # collapsed bias
        ],
        out_specs=pl.BlockSpec((tb, OUT_DIM), lambda i: (i, 0)),
        compiler_params=pltpu.CompilerParams(
            dimension_semantics=("parallel",),
        ),
        cost_estimate=pl.CostEstimate(
            flops=2 * b_pad * IN_DIM * OUT_DIM,
            transcendentals=b_pad,
            bytes_accessed=4 * (b_pad * IN_DIM + b_pad * OUT_DIM
                                + IN_DIM * OUT_DIM + OUT_DIM),
        ),
    )(x, wc, bc)
    return out[:b]


def init_params(key):
    """Deterministic init matching the nn.Linear shapes of the module.
    PyTorch stores W as (out, in); we store the transpose (in, out)."""
    dims = [(21, 50), (50, 50), (50, 50), (50, 10)]
    params = {}
    for i, (fan_in, fan_out) in enumerate(dims, start=1):
        key, kw, kb = jax.random.split(key, 3)
        bound = 1.0 / jnp.sqrt(jnp.float32(fan_in))  # PyTorch-style uniform bound
        params[f"w{i}"] = jax.random.uniform(
            kw, (fan_in, fan_out), jnp.float32, minval=-bound, maxval=bound)
        params[f"b{i}"] = jax.random.uniform(
            kb, (1, fan_out), jnp.float32, minval=-bound, maxval=bound)
    return params


def mlp_reference(x, params):
    """Un-collapsed reference: the original 4-layer forward + L2 normalize."""
    h = x @ params["w1"] + params["b1"]
    h = h @ params["w2"] + params["b2"]
    h = h @ params["w3"] + params["b3"]
    h = h @ params["w4"] + params["b4"]
    norm = jnp.sqrt(jnp.sum(h * h, axis=1, keepdims=True))
    return h / jnp.maximum(norm, 1e-12)


if __name__ == "__main__":
    key = jax.random.PRNGKey(0)
    key, kx = jax.random.split(key)
    batch = 8
    x = jax.random.normal(kx, (batch, IN_DIM), jnp.float32)
    params = init_params(key)

    y = mlp_forward(x, params)
    jax.block_until_ready(y)

    y_ref = mlp_reference(x, params)
    assert y.shape == (batch, OUT_DIM)
    assert jnp.allclose(y, y_ref, atol=1e-5, rtol=1e-5), "mismatch vs reference"

    print("KERNEL_OK")
</pallas_src>

<mosaic_0001>
module attributes {stable_mosaic.version = 11 : i64} {
  func.func @_mlp_kernel(%arg0: i32, %arg1: memref<8x21xf32, #tpu.memory_space<vmem>>, %arg2: memref<21x10xf32, #tpu.memory_space<vmem>>, %arg3: memref<1x10xf32, #tpu.memory_space<vmem>>, %arg4: memref<8x10xf32, #tpu.memory_space<vmem>>) attributes {dimension_semantics = [#tpu.dimension_semantics<parallel>], iteration_bounds = array<i64: 1>, scalar_prefetch = 0 : i64, scratch_operands = 0 : i64, tpu.core_type = #tpu.core_type<tc>, window_params = [{transform_indices = @transform_0, window_bounds = array<i64: 8, 21>}, {pipeline_mode = #tpu.pipeline_mode<synchronous>, transform_indices = @transform_1, window_bounds = array<i64: 21, 10>}, {pipeline_mode = #tpu.pipeline_mode<synchronous>, transform_indices = @transform_2, window_bounds = array<i64: 1, 10>}, {transform_indices = @transform_3, window_bounds = array<i64: 8, 10>}]} {
    %c0 = arith.constant 0 : index
    %c0_0 = arith.constant 0 : index
    %0 = vector.load %arg1[%c0, %c0_0] : memref<8x21xf32, #tpu.memory_space<vmem>>, vector<8x21xf32>
    %c0_1 = arith.constant 0 : index
    %c0_2 = arith.constant 0 : index
    %1 = vector.load %arg2[%c0_1, %c0_2] : memref<21x10xf32, #tpu.memory_space<vmem>>, vector<21x10xf32>
    %cst = arith.constant dense<0.000000e+00> : vector<8x10xf32>
    %2 = tpu.matmul %0, %1, %cst {dimension_numbers = #tpu.dot_dimension_numbers<[1], [0], [0], [1], [0, 0, 1, 1], [], []>} : vector<8x21xf32>, vector<21x10xf32>, vector<8x10xf32> -> vector<8x10xf32>
    %c0_3 = arith.constant 0 : index
    %c0_4 = arith.constant 0 : index
    %3 = vector.load %arg3[%c0_3, %c0_4] : memref<1x10xf32, #tpu.memory_space<vmem>>, vector<1x10xf32>
    %4 = vector.broadcast %3 : vector<1x10xf32> to vector<8x10xf32>
    %5 = arith.addf %2, %4 : vector<8x10xf32>
    %6 = arith.mulf %5, %5 : vector<8x10xf32>
    %cst_5 = arith.constant dense<0.000000e+00> : vector<8xf32>
    %7 = vector.multi_reduction <add>, %6, %cst_5 [1] : vector<8x10xf32> to vector<8xf32>
    %8 = vector.shape_cast %7 : vector<8xf32> to vector<8x1xf32>
    %9 = math.sqrt %8 : vector<8x1xf32>
    %cst_6 = arith.constant 9.99999996E-13 : f32
    %10 = vector.broadcast %cst_6 : f32 to vector<8x1xf32>
    %11 = arith.maximumf %9, %10 : vector<8x1xf32>
    %12 = tpu.reciprocal %11 : vector<8x1xf32> -> vector<8x1xf32>
    %13 = vector.broadcast %12 : vector<8x1xf32> to vector<8x10xf32>
    %14 = arith.mulf %5, %13 : vector<8x10xf32>
    %c0_7 = arith.constant 0 : index
    %c0_8 = arith.constant 0 : index
    %15 = vector.load %arg4[%c0_7, %c0_8] : memref<8x10xf32, #tpu.memory_space<vmem>>, vector<8x10xf32>
    tpu.vector_store %arg4[%c0_7, %c0_8], %14 {strides = array<i32>} : memref<8x10xf32, #tpu.memory_space<vmem>>, vector<8x10xf32>,
    return
  }
  func.func @transform_0(%arg0: i32) -> (i32, i32) {
    %c0_i32 = arith.constant 0 : i32
    %c0_i32_0 = arith.constant 0 : i32
    return %arg0, %c0_i32 : i32, i32
  }
  func.func @transform_1(%arg0: i32) -> (i32, i32) {
    %c0_i32 = arith.constant 0 : i32
    %c0_i32_0 = arith.constant 0 : i32
    %c0_i32_1 = arith.constant 0 : i32
    return %c0_i32, %c0_i32_0 : i32, i32
  }
  func.func @transform_2(%arg0: i32) -> (i32, i32) {
    %c0_i32 = arith.constant 0 : i32
    %c0_i32_0 = arith.constant 0 : i32
    %c0_i32_1 = arith.constant 0 : i32
    return %c0_i32, %c0_i32_0 : i32, i32
  }
  func.func @transform_3(%arg0: i32) -> (i32, i32) {
    %c0_i32 = arith.constant 0 : i32
    %c0_i32_0 = arith.constant 0 : i32
    return %arg0, %c0_i32 : i32, i32
  }
}

</mosaic_0001>

<bundles_post_ra>
// kernel: mlp_forward.1
= control target key start
LH: loop header
LB: loop body
LE: loop exit
PB: predicated region body
PF: predicated region fallthrough
CT: control target
= control target key end

     0   :  { %v185_v2 = vmov 0.0|0.0   ;;  %vm186_vm0 = vmmov 0   ;;  %v187_v4 = vmov 0.0   ;;  %s238_s0 = inlined_call_operand.vmem [shape: f32[8,21], index: 0, kind: input, shape index: {}]   ;;  %s239_s1 = inlined_call_operand.vmem [shape: f32[21,10], index: 1, kind: input, shape index: {}]   ;;  %s240_s2 = inlined_call_operand.vmem [shape: f32[1,10], index: 2, kind: input, shape index: {}]   ;;  %s241_s3 = inlined_call_operand.hbm [shape: f32[8,10], index: 3, kind: output, shape index: {}]  }
   0x1   :  { %v16_v0 = vld [vmem:[%s239_s1] sm:$0xff]  ;;  %v17_v1 = vld [vmem:[%s239_s1 + $0x8] sm:$0xff]  ;;  %150 = vmatprep.subr.bf16.mxu0 %v185_v2  ;;  %147 = vmatprep.mubr.msk.f32.mxu0 %vm186_vm0, %v187_v4 }
   0x2   :  { %v151_v3 = vpack.c.bf16 %v17_v1, %v16_v0 }
   0x3   :  { %8 = vsyncpa [#allocation3], 0  ;;  %v18_v5 = vld [vmem:[%s239_s1 + $0x10] sm:$0x1f]  ;;  %vm30_vm1 = vcmask 1044480   ;;  %v15_v6 = vld [vmem:[%s238_s0] sm:$0xff] }
   0x4   :  { %152 = vmatpush3.bf16.msra.mxu0 %v151_v3  ;;  %vm26_vm2 = vcmask 171008   ;;  %v134_v7 = vld [vmem:[%s240_s2] ss:$0 sm:$0xff]  ;;  %vm105_vm3 = vcmask 80896   ;;  %s188_s0 = smov [#allocation2]  }
   0x5   :  { %145 = vmatprep.subr.mxu0 %v187_v4  ;;  %s126_s1 = sshll.u32 %s188_s0, 4  ;;  %s127_s1 = int_to_ptr.vmem [resolvable:$true] %s126_s1 }
   0x6   :  { %s161_s2 = scalar_lea.vmem %s127_s1, 128  ;;  %p166_p1 = scmp.lt.s32.totalorder %s127_s1, %s127_s1 }
   0x7   :  { %p162_p0 = scmp.ne.s32.totalorder %s127_s1, %s161_s2  ;;  %p167_p2 = scmp.lt.s32.totalorder %s161_s2, %s161_s2 }
   0x8   :  { %146 = vmatpush3.msk.msra.mxu0 %vm30_vm1, %v18_v5 }
   0x9   :  { %148 = vmatmul.mubr.msk.f32.vlgmr.msra.gmra.mrb[0].mxu0 %vm26_vm2, %v15_v6  ;;  %p168_p3 = por %p167_p2, %p166_p1 }
   0xb   :  { %p169_p4 = pnand %p168_p3, %p162_p0 }
  0xdc   :  { %v100_v8 = vpop.f32.mrb[0].mxu0 }
  0xdd   :  { %v101_v9 = vadd.f32 %v134_v7, %v100_v8  ;;  %v149_v10 = vpop.f32.mrb[1].mxu0 }
  0xdf   :  { %v104_v11 = vmul.f32 %v101_v9, %v101_v9 }
  0xe1   :  { %v106_v12 = vsel %vm105_vm3, %v104_v11, 0.0 }
  0xe2   :  { %107 = vadd.xlane.f32.xlu0 %v106_v12 }
 0x16f   :  { %v108_v13 = vpop.xlane.xlu0 %107 }
 0x170   :  { %157 = vrsqrt.f32 %v108_v13  ;;  %vm111_vm4 = vcmp.eq.f32.partialorder %v108_v13, inf  ;;  %v114_v16 = vand.u32 2147483648, %v108_v13  ;;  %vm113_vm5 = vcmp.eq.f32.partialorder %v108_v13, 0.0 }
 0x17a   :  { %v158_v14 = vpop.eup %157 }
 0x17b   :  { %v110_v15 = vmul.f32 %v158_v14, %v108_v13 }
 0x17d   :  { %v112_v17 = vsel %vm111_vm4, %v108_v13, %v110_v15 }
 0x17e   :  { %v115_v18 = vsel %vm113_vm5, %v114_v16, %v112_v17 }
 0x17f   :  { %v116_v19 = vmax.f32 %v115_v18, 1e-12 }
 0x181   :  { %159 = vrcp.f32 %v116_v19 }
 0x18b   :  { %v160_v20 = vpop.eup %159 }
 0x18c   :  { %v118_v21 = vmul.f32 %v160_v20, %v101_v9 }
 0x18e   :  { %119 = vst.msk [vmem:[#allocation2] sm:$0xff] %vm105_vm3, %v118_v21 }
 0x18f   :  { %172 = shalt.err (!%p169_p4)
}
 0x190   :  { %s173_s24 = scalar_lea.hbm %s241_s3, 128 }
 0x191   :  { %p174_p5 = scmp.ne.s32.totalorder %s241_s3, %s173_s24  ;;  %p177_p6 = scmp.lt.u32.totalorder %s173_s24, %s241_s3 }
 0x193   :  { %p179_p7 = pnand %p177_p6, %p174_p5 }
 0x195   :  { %182 = shalt.err (!%p179_p7)
}
 0x196   :  { %129 = dma.vmem_to_hbm [thread:$0]  %s127_s1, 128, %s241_s3, [#allocation3]  }
 0x197   :  { %183 = dma.done.wait [#allocation3], 128  }
 0x198   :  { %184 = vsyncadd [#allocation3], 4294967168 }
 0x199   :  { %133 = vsyncpa [#allocation3], 1 }

</bundles_post_ra>
